<compile_context>
chip_gen: v7x
topology: tpu7x:2x2x1
jax: 0.10.0
libtpu: 0.0.40
codegen_flags: <defaults>
</compile_context>

<pallas_src>
import functools
import math

import jax
import jax.numpy as jnp
from jax.experimental import pallas as pl
from jax.experimental.pallas import tpu as pltpu


def _round_up(n: int, m: int) -> int:
    return ((n + m - 1) // m) * m


def _choose_row_tile(M: int, D: int, itemsize: int) -> int:
    """Pick a row tile: ~1 MiB per x block, 8-aligned, clamped to [256, 2048]."""
    target_rows = (1 << 20) // max(D * itemsize, 1)
    tm = max(256, min(2048, target_rows))
    tm = max(8, (tm // 8) * 8)
    # Never exceed the (8-rounded) number of rows actually present.
    return min(tm, _round_up(max(M, 1), 8))


def _layernorm_kernel(x_ref, g_ref, b_ref, o_ref, *, eps: float):
    # x_ref: (tm, D), g_ref/b_ref: (1, D), o_ref: (tm, D)
    x = x_ref[...].astype(jnp.float32)
    d = x.shape[-1]
    mean = jnp.mean(x, axis=-1, keepdims=True)
    xc = x - mean
    # torch.Tensor.std default: unbiased estimator (divide by D-1)
    var = jnp.sum(xc * xc, axis=-1, keepdims=True) / (d - 1)
    inv = 1.0 / (jnp.sqrt(var) + eps)          # eps added to std, as in the module
    y = g_ref[...] * (xc * inv) + b_ref[...]
    o_ref[...] = y.astype(o_ref.dtype)


def layer_norm_pallas(x, gamma, beta, *, eps: float = 1e-6, tm: int | None = None):
    """LayerNorm over the last axis of x (any leading shape), PyTorch-style."""
    orig_shape = x.shape
    D = orig_shape[-1]
    M = math.prod(orig_shape[:-1]) if len(orig_shape) > 1 else 1
    x2d = x.reshape(M, D)

    itemsize = jnp.dtype(x.dtype).itemsize
    tm_eff = tm if tm is not None else _choose_row_tile(M, D, itemsize)
    tm_eff = min(tm_eff, _round_up(M, 8))

    num_blocks = pl.cdiv(M, tm_eff)
    M_pad = num_blocks * tm_eff
    if M_pad != M:
        x2d = jnp.pad(x2d, ((0, M_pad - M), (0, 0)))

    g2d = gamma.reshape(1, D).astype(jnp.float32)
    b2d = beta.reshape(1, D).astype(jnp.float32)

    kernel = functools.partial(_layernorm_kernel, eps=eps)
    bytes_io = 2 * M_pad * D * itemsize + 2 * D * 4

    out = pl.pallas_call(
        kernel,
        out_shape=jax.ShapeDtypeStruct((M_pad, D), x.dtype),
        grid_spec=pltpu.PrefetchScalarGridSpec(
            num_scalar_prefetch=0,
            grid=(num_blocks,),
            in_specs=[
                pl.BlockSpec((tm_eff, D), lambda i: (i, 0)),   # x row tile
                pl.BlockSpec((1, D), lambda i: (0, 0)),        # gamma (resident)
                pl.BlockSpec((1, D), lambda i: (0, 0)),        # beta  (resident)
            ],
            out_specs=pl.BlockSpec((tm_eff, D), lambda i: (i, 0)),
        ),
        compiler_params=pltpu.CompilerParams(
            dimension_semantics=("parallel",),
            vmem_limit_bytes=48 << 20,
        ),
        cost_estimate=pl.CostEstimate(
            flops=10 * M_pad * D,
            transcendentals=M_pad,
            bytes_accessed=bytes_io,
        ),
    )(x2d, g2d, b2d)

    if M_pad != M:
        out = out[:M]
    return out.reshape(orig_shape)


def decoder_forward(x, memory, src_mask, tgt_mask, norm_weight, norm_bias,
                    *, layers=(), eps: float = 1e-6, tm: int | None = None):
    """Decoder.forward: apply each decoder layer, then the final LayerNorm.

    `layers` are caller-supplied callables (x, memory, src_mask, tgt_mask) -> x,
    mirroring the module's injected `layer` argument.
    """
    # TODO(synk): the decoder sub-layer is an undefined external module in the
    # spec (only LayerNorm/clones are given); layers are applied as opaque
    # callables here rather than fused into the Pallas kernel.
    for layer in layers:
        x = layer(x, memory, src_mask, tgt_mask)
    return layer_norm_pallas(x, norm_weight, norm_bias, eps=eps, tm=tm)


def _layernorm_ref(x, gamma, beta, eps=1e-6):
    mean = jnp.mean(x, axis=-1, keepdims=True)
    std = jnp.std(x, axis=-1, keepdims=True, ddof=1)   # torch default: unbiased
    return gamma * (x - mean) / (std + eps) + beta


if __name__ == "__main__":
    # Small shapes consistent with the module: (batch, seq, d_model), N layers.
    batch, seq, d_model, n_layers = 2, 8, 32, 2

    key = jax.random.PRNGKey(0)
    kx, km, kg, kb = jax.random.split(key, 4)

    x = jax.random.normal(kx, (batch, seq, d_model), jnp.float32)
    memory = jax.random.normal(km, (batch, seq, d_model), jnp.float32)
    src_mask = jnp.ones((batch, 1, seq), jnp.float32)
    tgt_mask = jnp.ones((batch, seq, seq), jnp.float32)

    # LayerNorm parameters (module inits ones/zeros; perturb so the affine
    # part of the kernel is actually exercised by the check).
    a_2 = 1.0 + 0.1 * jax.random.normal(kg, (d_model,), jnp.float32)
    b_2 = 0.1 * jax.random.normal(kb, (d_model,), jnp.float32)

    # Decoder layers are external/undefined in the spec -> identity callables.
    layers = tuple((lambda x, m, sm, tmk: x) for _ in range(n_layers))

    y = decoder_forward(x, memory, src_mask, tgt_mask, a_2, b_2, layers=layers)
    y = jax.block_until_ready(y)

    # Reference: apply the same (identity) layers, then PyTorch-style LayerNorm.
    x_ref = x
    for layer in layers:
        x_ref = layer(x_ref, memory, src_mask, tgt_mask)
    y_ref = _layernorm_ref(x_ref, a_2, b_2)

    assert y.shape == (batch, seq, d_model)
    assert jnp.allclose(y, y_ref, atol=1e-5, rtol=1e-5), float(
        jnp.max(jnp.abs(y - y_ref)))

    # Also exercise a row count that is NOT a multiple of the tile (padding path).
    x_odd = jax.random.normal(kx, (3, 7, d_model), jnp.float32)
    y_odd = jax.block_until_ready(layer_norm_pallas(x_odd, a_2, b_2))
    assert jnp.allclose(y_odd, _layernorm_ref(x_odd, a_2, b_2), atol=1e-5, rtol=1e-5)

    print("KERNEL_OK")
</pallas_src>

<mosaic_0001>
module attributes {stable_mosaic.version = 11 : i64} {
  func.func @_layernorm_kernel(%arg0: i32, %arg1: memref<16x32xf32, #tpu.memory_space<vmem>>, %arg2: memref<1x32xf32, #tpu.memory_space<vmem>>, %arg3: memref<1x32xf32, #tpu.memory_space<vmem>>, %arg4: memref<16x32xf32, #tpu.memory_space<vmem>>) attributes {dimension_semantics = [#tpu.dimension_semantics<parallel>], iteration_bounds = array<i64: 1>, scalar_prefetch = 0 : i64, scratch_operands = 0 : i64, tpu.core_type = #tpu.core_type<tc>, window_params = [{transform_indices = @transform_0, window_bounds = array<i64: 16, 32>}, {pipeline_mode = #tpu.pipeline_mode<synchronous>, transform_indices = @transform_1, window_bounds = array<i64: 1, 32>}, {pipeline_mode = #tpu.pipeline_mode<synchronous>, transform_indices = @transform_2, window_bounds = array<i64: 1, 32>}, {transform_indices = @transform_3, window_bounds = array<i64: 16, 32>}]} {
    %c0 = arith.constant 0 : index
    %c0_0 = arith.constant 0 : index
    %0 = vector.load %arg1[%c0, %c0_0] : memref<16x32xf32, #tpu.memory_space<vmem>>, vector<16x32xf32>
    %cst = arith.constant dense<0.000000e+00> : vector<16xf32>
    %1 = vector.multi_reduction <add>, %0, %cst [1] : vector<16x32xf32> to vector<16xf32>
    %2 = vector.shape_cast %1 : vector<16xf32> to vector<16x1xf32>
    %cst_1 = arith.constant 3.200000e+01 : f32
    %3 = vector.broadcast %cst_1 : f32 to vector<16x1xf32>
    %4 = arith.divf %2, %3 : vector<16x1xf32>
    %5 = vector.broadcast %4 : vector<16x1xf32> to vector<16x32xf32>
    %6 = arith.subf %0, %5 : vector<16x32xf32>
    %7 = arith.mulf %6, %6 : vector<16x32xf32>
    %cst_2 = arith.constant dense<0.000000e+00> : vector<16xf32>
    %8 = vector.multi_reduction <add>, %7, %cst_2 [1] : vector<16x32xf32> to vector<16xf32>
    %9 = vector.shape_cast %8 : vector<16xf32> to vector<16x1xf32>
    %cst_3 = arith.constant 3.100000e+01 : f32
    %10 = vector.broadcast %cst_3 : f32 to vector<16x1xf32>
    %11 = arith.divf %9, %10 : vector<16x1xf32>
    %12 = math.sqrt %11 : vector<16x1xf32>
    %cst_4 = arith.constant 9.99999997E-7 : f32
    %13 = vector.broadcast %cst_4 : f32 to vector<16x1xf32>
    %14 = arith.addf %12, %13 : vector<16x1xf32>
    %cst_5 = arith.constant 1.000000e+00 : f32
    %15 = vector.broadcast %cst_5 : f32 to vector<16x1xf32>
    %16 = arith.divf %15, %14 : vector<16x1xf32>
    %c0_6 = arith.constant 0 : index
    %c0_7 = arith.constant 0 : index
    %17 = vector.load %arg2[%c0_6, %c0_7] : memref<1x32xf32, #tpu.memory_space<vmem>>, vector<1x32xf32>
    %18 = vector.broadcast %16 : vector<16x1xf32> to vector<16x32xf32>
    %19 = arith.mulf %6, %18 : vector<16x32xf32>
    %20 = vector.broadcast %17 : vector<1x32xf32> to vector<16x32xf32>
    %21 = arith.mulf %20, %19 : vector<16x32xf32>
    %c0_8 = arith.constant 0 : index
    %c0_9 = arith.constant 0 : index
    %22 = vector.load %arg3[%c0_8, %c0_9] : memref<1x32xf32, #tpu.memory_space<vmem>>, vector<1x32xf32>
    %23 = vector.broadcast %22 : vector<1x32xf32> to vector<16x32xf32>
    %24 = arith.addf %21, %23 : vector<16x32xf32>
    %c0_10 = arith.constant 0 : index
    %c0_11 = arith.constant 0 : index
    %25 = vector.load %arg4[%c0_10, %c0_11] : memref<16x32xf32, #tpu.memory_space<vmem>>, vector<16x32xf32>
    tpu.vector_store %arg4[%c0_10, %c0_11], %24 {strides = array<i32>} : memref<16x32xf32, #tpu.memory_space<vmem>>, vector<16x32xf32>,
    return
  }
  func.func @transform_0(%arg0: i32) -> (i32, i32) {
    %c0_i32 = arith.constant 0 : i32
    %c0_i32_0 = arith.constant 0 : i32
    return %arg0, %c0_i32 : i32, i32
  }
  func.func @transform_1(%arg0: i32) -> (i32, i32) {
    %c0_i32 = arith.constant 0 : i32
    %c0_i32_0 = arith.constant 0 : i32
    %c0_i32_1 = arith.constant 0 : i32
    return %c0_i32, %c0_i32_0 : i32, i32
  }
  func.func @transform_2(%arg0: i32) -> (i32, i32) {
    %c0_i32 = arith.constant 0 : i32
    %c0_i32_0 = arith.constant 0 : i32
    %c0_i32_1 = arith.constant 0 : i32
    return %c0_i32, %c0_i32_0 : i32, i32
  }
  func.func @transform_3(%arg0: i32) -> (i32, i32) {
    %c0_i32 = arith.constant 0 : i32
    %c0_i32_0 = arith.constant 0 : i32
    return %arg0, %c0_i32 : i32, i32
  }
}

</mosaic_0001>

<bundles_post_ra>
// kernel: tpu_custom_call.1
= control target key start
LH: loop header
LB: loop body
LE: loop exit
PB: predicated region body
PF: predicated region fallthrough
CT: control target
= control target key end

     0   :  { %8 = vsyncpa [#allocation3], 0  ;;  %s241_s0 = inlined_call_operand.hbm [shape: f32[16,32], index: 0, kind: input, shape index: {}]   ;;  %s242_s1 = inlined_call_operand.vmem [shape: f32[1,32], index: 1, kind: input, shape index: {}]   ;;  %s243_s2 = inlined_call_operand.vmem [shape: f32[1,32], index: 2, kind: input, shape index: {}]   ;;  %s244_s3 = inlined_call_operand.hbm [shape: f32[16,32], index: 3, kind: output, shape index: {}]  }
   0x1   :  { %9 = vsyncpa [#allocation4], 0  ;;  %s175_s12 = smov [#allocation2]   ;;  %s127_s16 = scalar_lea.hbm %s241_s0, 256 }
   0x2   :  { %s15_s13 = sshll.u32 %s175_s12, 4  ;;  %p128_p0 = scmp.ne.s32.totalorder %s241_s0, %s127_s16  ;;  %s16_s13 = int_to_ptr.vmem [resolvable:$true] %s15_s13 }
   0x3   :  { %p131_p1 = scmp.lt.u32.totalorder %s127_s16, %s241_s0 }
   0x5   :  { %p133_p2 = pnand %p131_p1, %p128_p0 }
   0x7   :  { %136 = shalt.err (!%p133_p2)
}
   0x8   :  { %s137_s21 = scalar_lea.vmem %s16_s13, 256  ;;  %p142_p4 = scmp.lt.s32.totalorder %s16_s13, %s16_s13 }
   0x9   :  { %p138_p3 = scmp.ne.s32.totalorder %s16_s13, %s137_s21  ;;  %p143_p5 = scmp.lt.s32.totalorder %s137_s21, %s137_s21 }
   0xb   :  { %p144_p6 = por %p143_p5, %p142_p4 }
   0xd   :  { %p145_p7 = pnand %p144_p6, %p138_p3 }
   0xf   :  { %148 = shalt.err (!%p145_p7)
}
  0x10   :  { %s176_s22 = smov 128   ;;  %s177_s23 = smov 8  }
  0x11   :  { %21 = dma.hbm_to_vmem [thread:$0]  %s241_s0, 256, %s16_s13, [#allocation3], %s176_s22, %s176_s22, %s177_s23  }
  0x12   :  { %171 = dma.done.wait [#allocation3], 256  }
  0x13   :  { %172 = vsyncadd [#allocation3], 4294967040  ;;  %vm31_vm0 = vcmask 261120   ;;  %v29_v0 = vld [vmem:[#allocation2] sm:$0xff]  ;;  %v30_v1 = vld [vmem:[#allocation2 + $0x8] sm:$0xff]  ;;  %s178_s29 = smov [#allocation5]  }
  0x14   :  { %v32_v2 = vsel %vm31_vm0, %v29_v0, 0.0  ;;  %v35_v3 = vsel %vm31_vm0, %v30_v1, 0.0  ;;  %v113_v31 = vld [vmem:[%s242_s1] ss:$0 sm:$0xff]  ;;  %s101_s30 = sshll.u32 %s178_s29, 4  ;;  %s102_s30 = int_to_ptr.vmem [resolvable:$true] %s101_s30 }
  0x15   :  { %33 = vadd.xlane.f32.xlu0 %v32_v2  ;;  %v114_v33 = vld [vmem:[%s243_s2] ss:$0 sm:$0xff]  ;;  %s149_s4 = scalar_lea.vmem %s102_s30, 256  ;;  %p154_p9 = scmp.lt.s32.totalorder %s102_s30, %s102_s30 }
  0x16   :  { %p150_p8 = scmp.ne.s32.totalorder %s102_s30, %s149_s4  ;;  %p155_p10 = scmp.lt.s32.totalorder %s149_s4, %s149_s4 }
  0x18   :  { %p156_p11 = por %p155_p10, %p154_p9 }
  0x19   :  { %36 = vadd.xlane.f32.xlu0 %v35_v3 }
  0x1a   :  { %p157_p12 = pnand %p156_p11, %p150_p8 }
  0xa2   :  { %v34_v4 = vpop.xlane.xlu0 %33 }
  0xa3   :  { %v39_v5 = vmul.f32 0.03125, %v34_v4 }
  0xa5   :  { %v41_v6 = vsub.f32 %v29_v0, %v39_v5 }
  0xa6   :  { %v37_v7 = vpop.xlane.xlu0 %36 }
  0xa7   :  { %v40_v8 = vmul.f32 0.03125, %v37_v7  ;;  %v43_v9 = vmul.f32 %v41_v6, %v41_v6 }
  0xa9   :  { %v42_v10 = vsub.f32 %v30_v1, %v40_v8  ;;  %v45_v11 = vsel %vm31_vm0, %v43_v9, 0.0 }
  0xaa   :  { %46 = vadd.xlane.f32.xlu1 %v45_v11 }
  0xab   :  { %v44_v12 = vmul.f32 %v42_v10, %v42_v10 }
  0xad   :  { %v48_v13 = vsel %vm31_vm0, %v44_v12, 0.0 }
  0xae   :  { %49 = vadd.xlane.f32.xlu1 %v48_v13 }
 0x137   :  { %v47_v14 = vpop.xlane.xlu1 %46 }
 0x138   :  { %v52_v15 = vmul.f32 0.032258064, %v47_v14 }
 0x13a   :  { %119 = vrsqrt.f32 %v52_v15  ;;  %vm56_vm1 = vcmp.eq.f32.partialorder %v52_v15, inf  ;;  %v59_v20 = vand.u32 2147483648, %v52_v15  ;;  %vm58_vm2 = vcmp.eq.f32.partialorder %v52_v15, 0.0 }
 0x13b   :  { %v50_v16 = vpop.xlane.xlu1 %49 }
 0x13c   :  { %v53_v17 = vmul.f32 0.032258064, %v50_v16 }
 0x13e   :  { %121 = vrsqrt.f32 %v53_v17  ;;  %vm63_vm3 = vcmp.eq.f32.partialorder %v53_v17, inf  ;;  %v66_v26 = vand.u32 2147483648, %v53_v17  ;;  %vm65_vm4 = vcmp.eq.f32.partialorder %v53_v17, 0.0 }
 0x144   :  { %v120_v18 = vpop.eup %119 }
 0x145   :  { %v55_v19 = vmul.f32 %v120_v18, %v52_v15 }
 0x147   :  { %v57_v21 = vsel %vm56_vm1, %v52_v15, %v55_v19 }
 0x148   :  { %v122_v22 = vpop.eup %121  ;;  %v60_v23 = vsel %vm58_vm2, %v59_v20, %v57_v21 }
 0x149   :  { %v68_v24 = vadd.f32 1e-06, %v60_v23  ;;  %v62_v25 = vmul.f32 %v122_v22, %v53_v17 }
 0x14b   :  { %123 = vrcp.f32 %v68_v24  ;;  %v64_v27 = vsel %vm63_vm3, %v53_v17, %v62_v25 }
 0x14c   :  { %v67_v28 = vsel %vm65_vm4, %v66_v26, %v64_v27 }
 0x14d   :  { %v69_v29 = vadd.f32 1e-06, %v67_v28 }
 0x14f   :  { %125 = vrcp.f32 %v69_v29 }
 0x155   :  { %v124_v30 = vpop.eup %123 }
 0x156   :  { %v75_v32 = vmul.f32 %v124_v30, %v41_v6 }
 0x158   :  { %v83_v34 = vmul.f32 %v113_v31, %v75_v32 }
 0x159   :  { %v126_v35 = vpop.eup %125 }
 0x15a   :  { %v76_v36 = vmul.f32 %v126_v35, %v42_v10  ;;  %v92_v37 = vadd.f32 %v114_v33, %v83_v34 }
 0x15c   :  { %v84_v38 = vmul.f32 %v113_v31, %v76_v36  ;;  %94 = vst.msk [vmem:[#allocation5] sm:$0xff] %vm31_vm0, %v92_v37 }
 0x15e   :  { %v93_v39 = vadd.f32 %v114_v33, %v84_v38 }
 0x160   :  { %95 = vst.msk [vmem:[#allocation5 + $0x8] sm:$0xff] %vm31_vm0, %v93_v39 }
 0x161   :  { %160 = shalt.err (!%p157_p12)
}
 0x162   :  { %s161_s5 = scalar_lea.hbm %s244_s3, 256 }
 0x163   :  { %p162_p13 = scmp.ne.s32.totalorder %s244_s3, %s161_s5  ;;  %p165_p0 = scmp.lt.u32.totalorder %s161_s5, %s244_s3 }
 0x165   :  { %p167_p1 = pnand %p165_p0, %p162_p13 }
 0x167   :  { %170 = shalt.err (!%p167_p1)
}
 0x168   :  { %107 = dma.vmem_to_hbm [thread:$0]  %s102_s30, 256, %s244_s3, [#allocation4], %s176_s22, %s176_s22, %s177_s23  }
 0x169   :  { %173 = dma.done.wait [#allocation4], 256  }
 0x16a   :  { %174 = vsyncadd [#allocation4], 4294967040 }
 0x16b   :  { %111 = vsyncpa [#allocation3], 1 }
 0x16c   :  { %112 = vsyncpa [#allocation4], 1 }

</bundles_post_ra>
